<compile_context>
chip_gen: v7x
topology: tpu7x:2x2x1
jax: 0.10.0
libtpu: 0.0.40
codegen_flags: <defaults>
</compile_context>

<pallas_src>
import functools

import jax
import jax.numpy as jnp
from jax.experimental import pallas as pl
from jax.experimental.pallas import tpu as pltpu


def network_kernel(x_ref, w1_ref, b1_ref, w2_ref, b2_ref, out_ref,
                   *, num_classes, action_components, action_low, action_high):
    """Fused forward pass for the mu / sd / value heads.

    x_ref   : (B, T) int32 token ids in SMEM.
    w1_ref  : (num_classes, 3*H) fused first-layer weights  [mu | sd | value].
    b1_ref  : (1, 3*H)           fused first-layer bias.
    w2_ref  : (3*H, OUT_PAD)     block-diagonal second-layer weights (zero pad).
    b2_ref  : (1, OUT_PAD)       fused second-layer bias (zero pad).
    out_ref : (B, OUT_PAD)       lane-dense output; activations applied per column.
    """
    batch, seq_len = x_ref.shape

    # OneHotLike: per-row class counts.  Ids are scalars in SMEM; accumulate the
    # counts in int32 on a single (B, C) tile (one vreg here) and cast once.
    row = jax.lax.broadcasted_iota(jnp.int32, (batch, num_classes), 0)
    lane = jax.lax.broadcasted_iota(jnp.int32, (batch, num_classes), 1)
    counts = jnp.zeros((batch, num_classes), jnp.int32)
    for bi in range(batch):                      # B, T are small and static:
        for t in range(seq_len):                 # fully unrolled, scalar SMEM reads
            hit = (row == bi) & (lane == x_ref[bi, t])
            counts = counts + hit.astype(jnp.int32)
    feats = counts.astype(jnp.float32)           # (B, C), single cast

    # Two fused MXU matmuls replace the original 3 heads x 2 layers.
    h = jnp.dot(feats, w1_ref[...], preferred_element_type=jnp.float32) + b1_ref[...]
    h = jnp.maximum(h, 0.0)                      # ReLU (applies per head block)
    z = jnp.dot(h, w2_ref[...], preferred_element_type=jnp.float32) + b2_ref[...]

    # Per-column epilogue: Hardtanh on mu columns, Softplus on sd columns,
    # identity on the value column; padded columns stay exactly 0.
    a = action_components
    col = jax.lax.broadcasted_iota(jnp.int32, z.shape, 1)
    out_ref[...] = jnp.where(
        col < a,
        jnp.clip(z, action_low, action_high),
        jnp.where(col < 2 * a, jax.nn.softplus(z), z),
    )


def pack_params(params, *, action_components, out_pad):
    """Fuse per-head (w1, b1, w2, b2) params into 2 concatenated / block-diag tensors."""
    w1m, b1m, w2m, b2m = params["mu"]
    w1s, b1s, w2s, b2s = params["sd"]
    w1v, b1v, w2v, b2v = params["value"]
    hidden = w1m.shape[1]
    a = action_components

    w1_all = jnp.concatenate([w1m, w1s, w1v], axis=1)          # (C, 3H)
    b1_all = jnp.concatenate([b1m, b1s, b1v], axis=1)          # (1, 3H)

    w2_all = jnp.zeros((3 * hidden, out_pad), jnp.float32)     # block-diagonal, padded
    w2_all = w2_all.at[0:hidden, 0:a].set(w2m)
    w2_all = w2_all.at[hidden:2 * hidden, a:2 * a].set(w2s)
    w2_all = w2_all.at[2 * hidden:3 * hidden, 2 * a:2 * a + 1].set(w2v)

    b2_all = jnp.zeros((1, out_pad), jnp.float32)
    b2_all = b2_all.at[0, 0:a].set(b2m[0])
    b2_all = b2_all.at[0, a:2 * a].set(b2s[0])
    b2_all = b2_all.at[0, 2 * a].set(b2v[0, 0])
    return w1_all, b1_all, w2_all, b2_all


def network_forward(x, params, *, num_classes, action_components,
                    action_low, action_high):
    """x: (B, T) int32; params: dict of per-head (w1, b1, w2, b2)."""
    b_sz, _ = x.shape
    a = action_components
    out_pad = max(128, ((2 * a + 1 + 127) // 128) * 128)       # lane-dense output width

    w1_all, b1_all, w2_all, b2_all = pack_params(
        params, action_components=a, out_pad=out_pad)

    kernel = functools.partial(
        network_kernel,
        num_classes=num_classes,
        action_components=a,
        action_low=float(action_low),
        action_high=float(action_high),
    )

    out = pl.pallas_call(
        kernel,
        out_shape=jax.ShapeDtypeStruct((b_sz, out_pad), jnp.float32),
        in_specs=[
            pl.BlockSpec(memory_space=pltpu.MemorySpace.SMEM),   # token ids (scalars)
            pl.BlockSpec(memory_space=pltpu.MemorySpace.VMEM),   # w1_all
            pl.BlockSpec(memory_space=pltpu.MemorySpace.VMEM),   # b1_all
            pl.BlockSpec(memory_space=pltpu.MemorySpace.VMEM),   # w2_all
            pl.BlockSpec(memory_space=pltpu.MemorySpace.VMEM),   # b2_all
        ],
        out_specs=pl.BlockSpec(memory_space=pltpu.MemorySpace.VMEM),
    )(x, w1_all, b1_all, w2_all, b2_all)

    mu = out[:, :a]
    sd = out[:, a:2 * a]
    val = out[:, 2 * a:2 * a + 1]
    return mu, sd, val


# ----------------------------------------------------------------------------
# Parameter construction + pure-JAX reference (mirrors the PyTorch module).
# ----------------------------------------------------------------------------
def make_linear(key, fan_in, fan_out):
    """Deterministic init mimicking nn.Linear default U(-1/sqrt(fan_in), +...)."""
    kw, kb = jax.random.split(key)
    bound = 1.0 / float(fan_in) ** 0.5
    w = jax.random.uniform(kw, (fan_in, fan_out), jnp.float32, -bound, bound)
    b = jax.random.uniform(kb, (1, fan_out), jnp.float32, -bound, bound)
    return w, b


def make_params(key, num_classes, hidden, action_components):
    keys = jax.random.split(key, 6)
    params = {}
    for name, (k1, k2), out_dim in (
        ("mu", keys[0:2], action_components),
        ("sd", keys[2:4], action_components),
        ("value", keys[4:6], 1),
    ):
        w1, b1 = make_linear(k1, num_classes, hidden)
        w2, b2 = make_linear(k2, hidden, out_dim)
        params[name] = (w1, b1, w2, b2)
    return params


def reference_forward(x, params, *, num_classes, action_low, action_high):
    feats = jax.nn.one_hot(x, num_classes, dtype=jnp.float32).sum(axis=1)

    def head(p):
        w1, b1, w2, b2 = p
        return jnp.maximum(feats @ w1 + b1, 0.0) @ w2 + b2

    mu = jnp.clip(head(params["mu"]), action_low, action_high)
    sd = jax.nn.softplus(head(params["sd"]))
    val = head(params["value"])
    return mu, sd, val


if __name__ == "__main__":
    # Module-consistent small shapes:
    #   env.weights (num_classes) = 32, args.hidden_layer = 32,
    #   action_components = 1, action range = (-1.0, 1.0),
    #   states: (batch=2, tokens=8) integer indices in [0, 32).
    num_classes = 32
    hidden = 32
    action_components = 1
    action_low, action_high = -1.0, 1.0
    batch, tokens = 2, 8

    key = jax.random.PRNGKey(0)
    k_params, k_x = jax.random.split(key)
    params = make_params(k_params, num_classes, hidden, action_components)
    x = jax.random.randint(k_x, (batch, tokens), 0, num_classes, dtype=jnp.int32)

    mu, sd, val = network_forward(
        x, params,
        num_classes=num_classes, action_components=action_components,
        action_low=action_low, action_high=action_high)
    jax.block_until_ready((mu, sd, val))

    mu_r, sd_r, val_r = reference_forward(
        x, params,
        num_classes=num_classes, action_low=action_low, action_high=action_high)

    assert mu.shape == (batch, action_components)
    assert sd.shape == (batch, action_components)
    assert val.shape == (batch, 1)
    assert jnp.allclose(mu, mu_r, atol=1e-5)
    assert jnp.allclose(sd, sd_r, atol=1e-5)
    assert jnp.allclose(val, val_r, atol=1e-5)

    print("KERNEL_OK")
</pallas_src>

<mosaic_0001>
module attributes {stable_mosaic.version = 11 : i64} {
  func.func @network_kernel(%arg0: memref<2x8xi32, #tpu.memory_space<smem>>, %arg1: memref<32x96xf32, #tpu.memory_space<vmem>>, %arg2: memref<1x96xf32, #tpu.memory_space<vmem>>, %arg3: memref<96x128xf32, #tpu.memory_space<vmem>>, %arg4: memref<1x128xf32, #tpu.memory_space<vmem>>, %arg5: memref<2x128xf32, #tpu.memory_space<vmem>>) attributes {dimension_semantics = [], scalar_prefetch = 0 : i64, scratch_operands = 0 : i64, tpu.core_type = #tpu.core_type<tc>} {
    %0 = tpu.iota {dimensions = array<i32: 0>} : vector<2x32xi32>
    %1 = tpu.iota {dimensions = array<i32: 1>} : vector<2x32xi32>
    %c0_i32 = arith.constant 0 : i32
    %2 = vector.broadcast %c0_i32 : i32 to vector<2x32xi32>
    %c0_i32_0 = arith.constant 0 : i32
    %3 = vector.broadcast %c0_i32_0 : i32 to vector<2x32xi32>
    %4 = arith.cmpi eq, %0, %3 : vector<2x32xi32>
    %c0 = arith.constant 0 : index
    %c0_1 = arith.constant 0 : index
    %5 = memref.load %arg0[%c0, %c0_1] : memref<2x8xi32, #tpu.memory_space<smem>>
    %6 = vector.broadcast %5 : i32 to vector<2x32xi32>
    %7 = arith.cmpi eq, %1, %6 : vector<2x32xi32>
    %8 = arith.andi %4, %7 : vector<2x32xi1>
    %9 = arith.extui %8 : vector<2x32xi1> to vector<2x32xi32>
    %10 = arith.addi %2, %9 : vector<2x32xi32>
    %c0_i32_2 = arith.constant 0 : i32
    %11 = vector.broadcast %c0_i32_2 : i32 to vector<2x32xi32>
    %12 = arith.cmpi eq, %0, %11 : vector<2x32xi32>
    %c0_3 = arith.constant 0 : index
    %c1 = arith.constant 1 : index
    %13 = memref.load %arg0[%c0_3, %c1] : memref<2x8xi32, #tpu.memory_space<smem>>
    %14 = vector.broadcast %13 : i32 to vector<2x32xi32>
    %15 = arith.cmpi eq, %1, %14 : vector<2x32xi32>
    %16 = arith.andi %12, %15 : vector<2x32xi1>
    %17 = arith.extui %16 : vector<2x32xi1> to vector<2x32xi32>
    %18 = arith.addi %10, %17 : vector<2x32xi32>
    %c0_i32_4 = arith.constant 0 : i32
    %19 = vector.broadcast %c0_i32_4 : i32 to vector<2x32xi32>
    %20 = arith.cmpi eq, %0, %19 : vector<2x32xi32>
    %c0_5 = arith.constant 0 : index
    %c2 = arith.constant 2 : index
    %21 = memref.load %arg0[%c0_5, %c2] : memref<2x8xi32, #tpu.memory_space<smem>>
    %22 = vector.broadcast %21 : i32 to vector<2x32xi32>
    %23 = arith.cmpi eq, %1, %22 : vector<2x32xi32>
    %24 = arith.andi %20, %23 : vector<2x32xi1>
    %25 = arith.extui %24 : vector<2x32xi1> to vector<2x32xi32>
    %26 = arith.addi %18, %25 : vector<2x32xi32>
    %c0_i32_6 = arith.constant 0 : i32
    %27 = vector.broadcast %c0_i32_6 : i32 to vector<2x32xi32>
    %28 = arith.cmpi eq, %0, %27 : vector<2x32xi32>
    %c0_7 = arith.constant 0 : index
    %c3 = arith.constant 3 : index
    %29 = memref.load %arg0[%c0_7, %c3] : memref<2x8xi32, #tpu.memory_space<smem>>
    %30 = vector.broadcast %29 : i32 to vector<2x32xi32>
    %31 = arith.cmpi eq, %1, %30 : vector<2x32xi32>
    %32 = arith.andi %28, %31 : vector<2x32xi1>
    %33 = arith.extui %32 : vector<2x32xi1> to vector<2x32xi32>
    %34 = arith.addi %26, %33 : vector<2x32xi32>
    %c0_i32_8 = arith.constant 0 : i32
    %35 = vector.broadcast %c0_i32_8 : i32 to vector<2x32xi32>
    %36 = arith.cmpi eq, %0, %35 : vector<2x32xi32>
    %c0_9 = arith.constant 0 : index
    %c4 = arith.constant 4 : index
    %37 = memref.load %arg0[%c0_9, %c4] : memref<2x8xi32, #tpu.memory_space<smem>>
    %38 = vector.broadcast %37 : i32 to vector<2x32xi32>
    %39 = arith.cmpi eq, %1, %38 : vector<2x32xi32>
    %40 = arith.andi %36, %39 : vector<2x32xi1>
    %41 = arith.extui %40 : vector<2x32xi1> to vector<2x32xi32>
    %42 = arith.addi %34, %41 : vector<2x32xi32>
    %c0_i32_10 = arith.constant 0 : i32
    %43 = vector.broadcast %c0_i32_10 : i32 to vector<2x32xi32>
    %44 = arith.cmpi eq, %0, %43 : vector<2x32xi32>
    %c0_11 = arith.constant 0 : index
    %c5 = arith.constant 5 : index
    %45 = memref.load %arg0[%c0_11, %c5] : memref<2x8xi32, #tpu.memory_space<smem>>
    %46 = vector.broadcast %45 : i32 to vector<2x32xi32>
    %47 = arith.cmpi eq, %1, %46 : vector<2x32xi32>
    %48 = arith.andi %44, %47 : vector<2x32xi1>
    %49 = arith.extui %48 : vector<2x32xi1> to vector<2x32xi32>
    %50 = arith.addi %42, %49 : vector<2x32xi32>
    %c0_i32_12 = arith.constant 0 : i32
    %51 = vector.broadcast %c0_i32_12 : i32 to vector<2x32xi32>
    %52 = arith.cmpi eq, %0, %51 : vector<2x32xi32>
    %c0_13 = arith.constant 0 : index
    %c6 = arith.constant 6 : index
    %53 = memref.load %arg0[%c0_13, %c6] : memref<2x8xi32, #tpu.memory_space<smem>>
    %54 = vector.broadcast %53 : i32 to vector<2x32xi32>
    %55 = arith.cmpi eq, %1, %54 : vector<2x32xi32>
    %56 = arith.andi %52, %55 : vector<2x32xi1>
    %57 = arith.extui %56 : vector<2x32xi1> to vector<2x32xi32>
    %58 = arith.addi %50, %57 : vector<2x32xi32>
    %c0_i32_14 = arith.constant 0 : i32
    %59 = vector.broadcast %c0_i32_14 : i32 to vector<2x32xi32>
    %60 = arith.cmpi eq, %0, %59 : vector<2x32xi32>
    %c0_15 = arith.constant 0 : index
    %c7 = arith.constant 7 : index
    %61 = memref.load %arg0[%c0_15, %c7] : memref<2x8xi32, #tpu.memory_space<smem>>
    %62 = vector.broadcast %61 : i32 to vector<2x32xi32>
    %63 = arith.cmpi eq, %1, %62 : vector<2x32xi32>
    %64 = arith.andi %60, %63 : vector<2x32xi1>
    %65 = arith.extui %64 : vector<2x32xi1> to vector<2x32xi32>
    %66 = arith.addi %58, %65 : vector<2x32xi32>
    %c1_i32 = arith.constant 1 : i32
    %67 = vector.broadcast %c1_i32 : i32 to vector<2x32xi32>
    %68 = arith.cmpi eq, %0, %67 : vector<2x32xi32>
    %c1_16 = arith.constant 1 : index
    %c0_17 = arith.constant 0 : index
    %69 = memref.load %arg0[%c1_16, %c0_17] : memref<2x8xi32, #tpu.memory_space<smem>>
    %70 = vector.broadcast %69 : i32 to vector<2x32xi32>
    %71 = arith.cmpi eq, %1, %70 : vector<2x32xi32>
    %72 = arith.andi %68, %71 : vector<2x32xi1>
    %73 = arith.extui %72 : vector<2x32xi1> to vector<2x32xi32>
    %74 = arith.addi %66, %73 : vector<2x32xi32>
    %c1_i32_18 = arith.constant 1 : i32
    %75 = vector.broadcast %c1_i32_18 : i32 to vector<2x32xi32>
    %76 = arith.cmpi eq, %0, %75 : vector<2x32xi32>
    %c1_19 = arith.constant 1 : index
    %c1_20 = arith.constant 1 : index
    %77 = memref.load %arg0[%c1_19, %c1_20] : memref<2x8xi32, #tpu.memory_space<smem>>
    %78 = vector.broadcast %77 : i32 to vector<2x32xi32>
    %79 = arith.cmpi eq, %1, %78 : vector<2x32xi32>
    %80 = arith.andi %76, %79 : vector<2x32xi1>
    %81 = arith.extui %80 : vector<2x32xi1> to vector<2x32xi32>
    %82 = arith.addi %74, %81 : vector<2x32xi32>
    %c1_i32_21 = arith.constant 1 : i32
    %83 = vector.broadcast %c1_i32_21 : i32 to vector<2x32xi32>
    %84 = arith.cmpi eq, %0, %83 : vector<2x32xi32>
    %c1_22 = arith.constant 1 : index
    %c2_23 = arith.constant 2 : index
    %85 = memref.load %arg0[%c1_22, %c2_23] : memref<2x8xi32, #tpu.memory_space<smem>>
    %86 = vector.broadcast %85 : i32 to vector<2x32xi32>
    %87 = arith.cmpi eq, %1, %86 : vector<2x32xi32>
    %88 = arith.andi %84, %87 : vector<2x32xi1>
    %89 = arith.extui %88 : vector<2x32xi1> to vector<2x32xi32>
    %90 = arith.addi %82, %89 : vector<2x32xi32>
    %c1_i32_24 = arith.constant 1 : i32
    %91 = vector.broadcast %c1_i32_24 : i32 to vector<2x32xi32>
    %92 = arith.cmpi eq, %0, %91 : vector<2x32xi32>
    %c1_25 = arith.constant 1 : index
    %c3_26 = arith.constant 3 : index
    %93 = memref.load %arg0[%c1_25, %c3_26] : memref<2x8xi32, #tpu.memory_space<smem>>
    %94 = vector.broadcast %93 : i32 to vector<2x32xi32>
    %95 = arith.cmpi eq, %1, %94 : vector<2x32xi32>
    %96 = arith.andi %92, %95 : vector<2x32xi1>
    %97 = arith.extui %96 : vector<2x32xi1> to vector<2x32xi32>
    %98 = arith.addi %90, %97 : vector<2x32xi32>
    %c1_i32_27 = arith.constant 1 : i32
    %99 = vector.broadcast %c1_i32_27 : i32 to vector<2x32xi32>
    %100 = arith.cmpi eq, %0, %99 : vector<2x32xi32>
    %c1_28 = arith.constant 1 : index
    %c4_29 = arith.constant 4 : index
    %101 = memref.load %arg0[%c1_28, %c4_29] : memref<2x8xi32, #tpu.memory_space<smem>>
    %102 = vector.broadcast %101 : i32 to vector<2x32xi32>
    %103 = arith.cmpi eq, %1, %102 : vector<2x32xi32>
    %104 = arith.andi %100, %103 : vector<2x32xi1>
    %105 = arith.extui %104 : vector<2x32xi1> to vector<2x32xi32>
    %106 = arith.addi %98, %105 : vector<2x32xi32>
    %c1_i32_30 = arith.constant 1 : i32
    %107 = vector.broadcast %c1_i32_30 : i32 to vector<2x32xi32>
    %108 = arith.cmpi eq, %0, %107 : vector<2x32xi32>
    %c1_31 = arith.constant 1 : index
    %c5_32 = arith.constant 5 : index
    %109 = memref.load %arg0[%c1_31, %c5_32] : memref<2x8xi32, #tpu.memory_space<smem>>
    %110 = vector.broadcast %109 : i32 to vector<2x32xi32>
    %111 = arith.cmpi eq, %1, %110 : vector<2x32xi32>
    %112 = arith.andi %108, %111 : vector<2x32xi1>
    %113 = arith.extui %112 : vector<2x32xi1> to vector<2x32xi32>
    %114 = arith.addi %106, %113 : vector<2x32xi32>
    %c1_i32_33 = arith.constant 1 : i32
    %115 = vector.broadcast %c1_i32_33 : i32 to vector<2x32xi32>
    %116 = arith.cmpi eq, %0, %115 : vector<2x32xi32>
    %c1_34 = arith.constant 1 : index
    %c6_35 = arith.constant 6 : index
    %117 = memref.load %arg0[%c1_34, %c6_35] : memref<2x8xi32, #tpu.memory_space<smem>>
    %118 = vector.broadcast %117 : i32 to vector<2x32xi32>
    %119 = arith.cmpi eq, %1, %118 : vector<2x32xi32>
    %120 = arith.andi %116, %119 : vector<2x32xi1>
    %121 = arith.extui %120 : vector<2x32xi1> to vector<2x32xi32>
    %122 = arith.addi %114, %121 : vector<2x32xi32>
    %c1_i32_36 = arith.constant 1 : i32
    %123 = vector.broadcast %c1_i32_36 : i32 to vector<2x32xi32>
    %124 = arith.cmpi eq, %0, %123 : vector<2x32xi32>
    %c1_37 = arith.constant 1 : index
    %c7_38 = arith.constant 7 : index
    %125 = memref.load %arg0[%c1_37, %c7_38] : memref<2x8xi32, #tpu.memory_space<smem>>
    %126 = vector.broadcast %125 : i32 to vector<2x32xi32>
    %127 = arith.cmpi eq, %1, %126 : vector<2x32xi32>
    %128 = arith.andi %124, %127 : vector<2x32xi1>
    %129 = arith.extui %128 : vector<2x32xi1> to vector<2x32xi32>
    %130 = arith.addi %122, %129 : vector<2x32xi32>
    %131 = arith.sitofp %130 : vector<2x32xi32> to vector<2x32xf32>
    %c0_39 = arith.constant 0 : index
    %c0_40 = arith.constant 0 : index
    %132 = vector.load %arg1[%c0_39, %c0_40] : memref<32x96xf32, #tpu.memory_space<vmem>>, vector<32x96xf32>
    %cst = arith.constant dense<0.000000e+00> : vector<2x96xf32>
    %133 = tpu.matmul %131, %132, %cst {dimension_numbers = #tpu.dot_dimension_numbers<[1], [0], [0], [1], [0, 0, 1, 1], [], []>} : vector<2x32xf32>, vector<32x96xf32>, vector<2x96xf32> -> vector<2x96xf32>
    %c0_41 = arith.constant 0 : index
    %c0_42 = arith.constant 0 : index
    %134 = vector.load %arg2[%c0_41, %c0_42] : memref<1x96xf32, #tpu.memory_space<vmem>>, vector<1x96xf32>
    %135 = vector.broadcast %134 : vector<1x96xf32> to vector<2x96xf32>
    %136 = arith.addf %133, %135 : vector<2x96xf32>
    %cst_43 = arith.constant 0.000000e+00 : f32
    %137 = vector.broadcast %cst_43 : f32 to vector<2x96xf32>
    %138 = arith.maximumf %136, %137 : vector<2x96xf32>
    %c0_44 = arith.constant 0 : index
    %c0_45 = arith.constant 0 : index
    %139 = vector.load %arg3[%c0_44, %c0_45] : memref<96x128xf32, #tpu.memory_space<vmem>>, vector<96x128xf32>
    %cst_46 = arith.constant dense<0.000000e+00> : vector<2x128xf32>
    %140 = tpu.matmul %138, %139, %cst_46 {dimension_numbers = #tpu.dot_dimension_numbers<[1], [0], [0], [1], [0, 0, 1, 1], [], []>} : vector<2x96xf32>, vector<96x128xf32>, vector<2x128xf32> -> vector<2x128xf32>
    %c0_47 = arith.constant 0 : index
    %c0_48 = arith.constant 0 : index
    %141 = vector.load %arg4[%c0_47, %c0_48] : memref<1x128xf32, #tpu.memory_space<vmem>>, vector<1x128xf32>
    %142 = vector.broadcast %141 : vector<1x128xf32> to vector<2x128xf32>
    %143 = arith.addf %140, %142 : vector<2x128xf32>
    %144 = tpu.iota {dimensions = array<i32: 1>} : vector<2x128xi32>
    %c1_i32_49 = arith.constant 1 : i32
    %145 = vector.broadcast %c1_i32_49 : i32 to vector<2x128xi32>
    %146 = arith.cmpi slt, %144, %145 : vector<2x128xi32>
    %cst_50 = arith.constant -1.000000e+00 : f32
    %cst_51 = arith.constant 1.000000e+00 : f32
    %147 = vector.broadcast %cst_50 : f32 to vector<2x128xf32>
    %148 = arith.maximumf %147, %143 : vector<2x128xf32>
    %149 = vector.broadcast %cst_51 : f32 to vector<2x128xf32>
    %150 = arith.minimumf %149, %148 : vector<2x128xf32>
    %c2_i32 = arith.constant 2 : i32
    %151 = vector.broadcast %c2_i32 : i32 to vector<2x128xi32>
    %152 = arith.cmpi slt, %144, %151 : vector<2x128xi32>
    %cst_52 = arith.constant 0.000000e+00 : f32
    %153 = vector.broadcast %cst_52 : f32 to vector<2x128xf32>
    %154 = arith.maximumf %143, %153 : vector<2x128xf32>
    %155 = vector.broadcast %cst_52 : f32 to vector<2x128xf32>
    %156 = arith.subf %143, %155 : vector<2x128xf32>
    %157 = arith.cmpf one, %156, %156 : vector<2x128xf32>
    %158 = vector.broadcast %cst_52 : f32 to vector<2x128xf32>
    %159 = arith.addf %143, %158 : vector<2x128xf32>
    %160 = math.absf %156 : vector<2x128xf32>
    %cst_53 = arith.constant 0.000000e+00 : f32
    %161 = vector.broadcast %cst_53 : f32 to vector<2x128xf32>
    %162 = arith.subf %161, %160 : vector<2x128xf32>
    %163 = math.exp %162 : vector<2x128xf32>
    %164 = math.log1p %163 : vector<2x128xf32>
    %165 = arith.addf %154, %164 : vector<2x128xf32>
    %166 = arith.select %157, %159, %165 : vector<2x128xi1>, vector<2x128xf32>
    %167 = arith.select %152, %166, %143 : vector<2x128xi1>, vector<2x128xf32>
    %168 = arith.select %146, %150, %167 : vector<2x128xi1>, vector<2x128xf32>
    %c0_54 = arith.constant 0 : index
    %c0_55 = arith.constant 0 : index
    %169 = vector.load %arg5[%c0_54, %c0_55] : memref<2x128xf32, #tpu.memory_space<vmem>>, vector<2x128xf32>
    tpu.vector_store %arg5[%c0_54, %c0_55], %168 {strides = array<i32>} : memref<2x128xf32, #tpu.memory_space<vmem>>, vector<2x128xf32>,
    return
  }
}

</mosaic_0001>

<bundles_post_ra>
// kernel: tpu_custom_call.1
= control target key start
LH: loop header
LB: loop body
LE: loop exit
PB: predicated region body
PF: predicated region fallthrough
CT: control target
= control target key end

     0   :  { %10 = vsyncpa [#allocation5], 0  ;;  %s797_s0 = inlined_call_operand.hbm [shape: s32[2,8], index: 0, kind: input, shape index: {}]   ;;  %s798_s1 = inlined_call_operand.hbm [shape: f32[32,96], index: 1, kind: input, shape index: {}]   ;;  %s799_s2 = inlined_call_operand.vmem [shape: f32[1,96], index: 2, kind: input, shape index: {}]   ;;  %s800_s3 = inlined_call_operand.hbm [shape: f32[96,128], index: 3, kind: input, shape index: {}]   ;;  %s801_s4 = inlined_call_operand.vmem [shape: f32[1,128], index: 4, kind: input, shape index: {}]   ;;  %s802_s5 = inlined_call_operand.hbm [shape: f32[2,128], index: 5, kind: output, shape index: {}]  }
   0x1   :  { %11 = vsyncpa [#allocation3], 0 }
   0x2   :  { %12 = vsyncpa [#allocation8], 0 }
   0x3   :  { %13 = vsyncpa [#allocation4], 0  ;;  %s497_s20 = scalar_lea.hbm %s797_s0, 32 }
   0x4   :  { %p498_p0 = scmp.ne.s32.totalorder %s797_s0, %s497_s20  ;;  %p501_p1 = scmp.lt.u32.totalorder %s497_s20, %s797_s0 }
   0x6   :  { %p503_p2 = pnand %p501_p1, %p498_p0 }
   0x8   :  { %506 = shalt.err (!%p503_p2)
}
   0x9   :  { %s581_s25 = smov [#allocation2]   ;;  %s582_s28 = smov [#allocation6]  }
   0xa   :  { %21 = dma.hbm_to_smem %s797_s0, 32, %s581_s25, [#allocation5]  }
   0xb   :  { %s27_s29 = sshll.u32 %s582_s28, 4  ;;  %s507_s7 = scalar_lea.hbm %s798_s1, 512  ;;  %s28_s29 = int_to_ptr.vmem [resolvable:$true] %s27_s29 }
   0xc   :  { %p508_p3 = scmp.ne.s32.totalorder %s798_s1, %s507_s7  ;;  %p511_p4 = scmp.lt.u32.totalorder %s507_s7, %s798_s1 }
   0xe   :  { %p513_p5 = pnand %p511_p4, %p508_p3 }
  0x10   :  { %516 = shalt.err (!%p513_p5)
}
  0x11   :  { %s517_s12 = scalar_lea.vmem %s28_s29, 512  ;;  %p522_p7 = scmp.lt.s32.totalorder %s28_s29, %s28_s29 }
  0x12   :  { %p518_p6 = scmp.ne.s32.totalorder %s28_s29, %s517_s12  ;;  %p523_p8 = scmp.lt.s32.totalorder %s517_s12, %s517_s12 }
  0x14   :  { %p524_p9 = por %p523_p8, %p522_p7 }
  0x16   :  { %p525_p10 = pnand %p524_p9, %p518_p6 }
  0x18   :  { %528 = shalt.err (!%p525_p10)
}
  0x19   :  { %s583_s0 = smov 128   ;;  %s584_s13 = smov 8  }
  0x1a   :  { %33 = dma.hbm_to_vmem [thread:$0]  %s798_s1, 512, %s28_s29, [#allocation3], %s583_s0, %s583_s0, %s584_s13  }
  0x1b   :  { %s585_s16 = smov [#allocation7]   ;;  %s529_s20 = scalar_lea.hbm %s800_s3, 1536 }
  0x1c   :  { %s41_s17 = sshll.u32 %s585_s16, 4  ;;  %p530_p11 = scmp.ne.s32.totalorder %s800_s3, %s529_s20  ;;  %s42_s17 = int_to_ptr.vmem [resolvable:$true] %s41_s17 }
  0x1d   :  { %p533_p12 = scmp.lt.u32.totalorder %s529_s20, %s800_s3 }
  0x1f   :  { %p535_p13 = pnand %p533_p12, %p530_p11 }
  0x21   :  { %538 = shalt.err (!%p535_p13)
}
  0x22   :  { %s539_s25 = scalar_lea.vmem %s42_s17, 1536  ;;  %p544_p1 = scmp.lt.s32.totalorder %s42_s17, %s42_s17 }
  0x23   :  { %p540_p0 = scmp.ne.s32.totalorder %s42_s17, %s539_s25  ;;  %p545_p2 = scmp.lt.s32.totalorder %s539_s25, %s539_s25 }
  0x25   :  { %p546_p3 = por %p545_p2, %p544_p1 }
  0x27   :  { %p547_p4 = pnand %p546_p3, %p540_p0 }
  0x29   :  { %550 = shalt.err (!%p547_p4)
}
  0x2a   :  { %47 = dma.hbm_to_vmem [thread:$0]  %s800_s3, 1536, %s42_s17, [#allocation8], %s583_s0, %s583_s0, %s584_s13  }
  0x2b   :  { %573 = dma.done.wait [#allocation5], 32  }
  0x2c   :  { %574 = vsyncadd [#allocation5], 4294967264 }
  0x2d   :  { %575 = dma.done.wait [#allocation3], 512  }
  0x2e   :  { %576 = vsyncadd [#allocation3], 4294966784 }
  0x2f   :  { %577 = dma.done.wait [#allocation8], 1536  }
  0x30   :  { %578 = vsyncadd [#allocation8], 4294965760 }
  0x31   :  { %59 = sfence }
  0x32   :  { %v162_v0 = vld [vmem:[#allocation6] sm:$0xff]  ;;  %v163_v1 = vld [vmem:[#allocation6 + $0x8] sm:$0xff]  ;;  %v164_v2 = vld [vmem:[#allocation6 + $0x10] sm:$0xff]  ;;  %v60_v3 = vlaneseq  ;;  %v586_v4 = vmov 0.0|0.0   ;;  %vm587_vm0 = vmmov 0   ;;  %v588_v7 = vmov 0.0  }
  0x33   :  { %459 = vmatprep.subr.bf16.mxu0 %v586_v4  ;;  %v460_v5 = vpack.c.bf16 %v163_v1, %v162_v0  ;;  %v165_v6 = vld [vmem:[#allocation6 + $0x18] sm:$0xff]  ;;  %429 = vmatprep.mubr.msk.f32.mxu0 %vm587_vm0, %v588_v7  ;;  %s65_s3 = sld [smem:[#allocation2]]  ;;  %s383_s27 = sld [smem:[#allocation2 + $0x1]]  ;;  %v248_v10 = vld [vmem:[#allocation7] sm:$0xff]  ;;  %v249_v12 = vld [vmem:[#allocation7 + $0x8] sm:$0xff]  ;;  %v589_v24 = vmov 0  }
  0x34   :  { %v658_v8 = vshrl.u32 %v60_v3, 7  ;;  %s384_s28 = sld [smem:[#allocation2 + $0x2]]  ;;  %s385_s29 = sld [smem:[#allocation2 + $0x3]]  ;;  %465 = vmatprep.subr.bf16.mxu1 %v586_v4  ;;  %456 = vmatprep.mubr.msk.f32.mxu1 %vm587_vm0, %v588_v7  ;;  %v463_v9 = vpack.c.bf16 %v165_v6, %v164_v2  ;;  %v666_v11 = vand.u32 127, %v60_v3  ;;  %v250_v13 = vld [vmem:[#allocation7 + $0x10] sm:$0xff]  ;;  %v466_v14 = vpack.c.bf16 %v249_v12, %v248_v10  ;;  %v251_v15 = vld [vmem:[#allocation7 + $0x18] sm:$0xff] }
  0x35   :  { %461 = vmatpush3.bf16.msra.mxu0 %v460_v5  ;;  %s661_s30 = sld [smem:[#allocation2 + $0x4]]  ;;  %s663_s6 = sld [smem:[#allocation2 + $0x5]]  ;;  %v469_v18 = vpack.c.bf16 %v251_v15, %v250_v13  ;;  %v252_v34 = vld [vmem:[#allocation7 + $0x20] sm:$0xff]  ;;  %v253_v35 = vld [vmem:[#allocation7 + $0x28] sm:$0xff]  ;;  %v254_v39 = vld [vmem:[#allocation7 + $0x30] sm:$0xff] }
  0x36   :  { %462 = vmatprep.subr.bf16.mxu0 %v586_v4  ;;  %s668_s7 = sld [smem:[#allocation2 + $0x6]]  ;;  %s670_s8 = sld [smem:[#allocation2 + $0x7]]  ;;  %vm64_vm1 = vcmp.eq.s32.totalorder %v658_v8, 0  ;;  %467 = vmatpush3.bf16.msra.mxu1 %v466_v14  ;;  %v255_v40 = vld [vmem:[#allocation7 + $0x38] sm:$0xff]  ;;  %v472_v42 = vpack.c.bf16 %v253_v35, %v252_v34  ;;  %v256_v49 = vld [vmem:[#allocation7 + $0x40] sm:$0xff]  ;;  %v257_v50 = vld [vmem:[#allocation7 + $0x48] sm:$0xff] }
  0x37   :  { %s673_s9 = sld [smem:[#allocation2 + $0x80]]  ;;  %s677_s10 = sld [smem:[#allocation2 + $0x81]]  ;;  %468 = vmatprep.subr.bf16.mxu1 %v586_v4  ;;  %v475_v46 = vpack.c.bf16 %v255_v40, %v254_v39  ;;  %v478_v55 = vpack.c.bf16 %v257_v50, %v256_v49  ;;  %v258_v14 = vld [vmem:[#allocation7 + $0x50] sm:$0xff]  ;;  %v259_v15 = vld [vmem:[#allocation7 + $0x58] sm:$0xff]  ;;  %v400_v21 = vld [vmem:[%s801_s4] ss:$0 sm:$0xff] }
  0x38   :  { %s695_s11 = sld [smem:[#allocation2 + $0x82]]  ;;  %s707_s12 = sld [smem:[#allocation2 + $0x83]] }
  0x39   :  { %464 = vmatpush3.bf16.msra.mxu0 %v463_v9  ;;  %v66_v16 = vstv %s65_s3  ;;  %v71_v17 = vstv %s383_s27  ;;  %s717_s0 = sld [smem:[#allocation2 + $0x84]]  ;;  %s724_s13 = sld [smem:[#allocation2 + $0x85]] }
  0x3a   :  { %vm67_vm2 = vcmp.eq.s32.totalorder %v666_v11, %v66_v16  ;;  %vm72_vm3 = vcmp.eq.s32.totalorder %v666_v11, %v71_v17  ;;  %v77_v19 = vstv %s384_s28  ;;  %v83_v20 = vstv %s385_s29  ;;  %470 = vmatpush3.bf16.msra.mxu1 %v469_v18  ;;  %s732_s14 = sld [smem:[#allocation2 + $0x86]]  ;;  %s739_s15 = sld [smem:[#allocation2 + $0x87]]  ;;  %v398_v17 = vld [vmem:[%s799_s2] ss:$0 sm:$0xff] }
  0x3b   :  { %vm68_vm4 = vmand %vm64_vm1, %vm67_vm2  ;;  %vm78_vm5 = vcmp.eq.s32.totalorder %v666_v11, %v77_v19  ;;  %vm683_vm6 = vcmp.eq.s32.totalorder %v666_v11, %v83_v20  ;;  %v89_v22 = vstv %s661_s30  ;;  %v95_v23 = vstv %s663_s6  ;;  %471 = vmatprep.subr.bf16.mxu1 %v586_v4  ;;  %s590_s2 = smov [#allocation9]  }
  0x3c   :  { %v69_v25 = vsel %vm68_vm4, 1, %v589_v24  ;;  %vm73_vm7 = vmand %vm64_vm1, %vm72_vm3  ;;  %vm90_vm8 = vcmp.eq.s32.totalorder %v666_v11, %v89_v22  ;;  %v101_v26 = vstv %s668_s7  ;;  %vm96_vm10 = vcmp.eq.s32.totalorder %v666_v11, %v95_v23  ;;  %s372_s4 = sshll.u32 %s590_s2, 4  ;;  %s373_s4 = int_to_ptr.vmem [resolvable:$true] %s372_s4 }
  0x3d   :  { %v74_v27 = vsel %vm73_vm7, 1, %v589_v24  ;;  %vm79_vm9 = vmand %vm64_vm1, %vm78_vm5  ;;  %v107_v30 = vstv %s670_s8  ;;  %vm102_vm13 = vcmp.eq.s32.totalorder %v666_v11, %v101_v26  ;;  %v114_v33 = vstv %s673_s9  ;;  %s551_s20 = scalar_lea.vmem %s373_s4, 32  ;;  %p556_p6 = scmp.lt.s32.totalorder %s373_s4, %s373_s4 }
  0x3e   :  { %v75_v28 = vadd.s32 %v74_v27, %v69_v25  ;;  %v80_v29 = vsel %vm79_vm9, 1, %v589_v24  ;;  %vm85_vm11 = vmand %vm64_vm1, %vm683_vm6  ;;  %vm108_vm15 = vcmp.eq.s32.totalorder %v666_v11, %v107_v30  ;;  %v120_v38 = vstv %s677_s10  ;;  %473 = vmatpush3.bf16.msra.mxu1 %v472_v42  ;;  %p552_p5 = scmp.ne.s32.totalorder %s373_s4, %s551_s20  ;;  %p557_p7 = scmp.lt.s32.totalorder %s551_s20, %s551_s20 }
  0x3f   :  { %v86_v31 = vsel %vm85_vm11, 1, %v589_v24  ;;  %vm91_vm12 = vmand %vm64_vm1, %vm90_vm8  ;;  %vm112_vm2 = vcmp.eq.s32.totalorder %v658_v8, 1  ;;  %vm115_vm3 = vcmp.eq.s32.totalorder %v666_v11, %v114_v33  ;;  %v126_v44 = vstv %s695_s11  ;;  %474 = vmatprep.subr.bf16.mxu1 %v586_v4 }
  0x40   :  { %v81_v32 = vadd.s32 %v80_v29, %v75_v28  ;;  %vm97_vm14 = vmand %vm64_vm1, %vm96_vm10  ;;  %v92_v36 = vsel %vm91_vm12, 1, %v589_v24  ;;  %vm121_vm5 = vcmp.eq.s32.totalorder %v666_v11, %v120_v38  ;;  %v132_v48 = vstv %s707_s12  ;;  %p558_p8 = por %p557_p7, %p556_p6 }
  0x41   :  { %vm103_vm0 = vmand %vm64_vm1, %vm102_vm13  ;;  %v98_v41 = vsel %vm97_vm14, 1, %v589_v24  ;;  %v138_v53 = vstv %s717_s0  ;;  %vm133_vm8 = vcmp.eq.s32.totalorder %v666_v11, %v132_v48  ;;  %v144_v57 = vstv %s724_s13 }
  0x42   :  { %v87_v37 = vadd.s32 %v86_v31, %v81_v32  ;;  %vm109_vm4 = vmand %vm64_vm1, %vm108_vm15  ;;  %v104_v45 = vsel %vm103_vm0, 1, %v589_v24  ;;  %vm127_vm1 = vcmp.eq.s32.totalorder %v666_v11, %v126_v44  ;;  %476 = vmatpush3.bf16.msra.mxu1 %v475_v46  ;;  %vm139_vm10 = vcmp.eq.s32.totalorder %v666_v11, %v138_v53  ;;  %p559_p9 = pnand %p558_p8, %p552_p5 }
  0x43   :  { %vm116_vm6 = vmand %vm112_vm2, %vm115_vm3  ;;  %v110_v51 = vsel %vm109_vm4, 1, %v589_v24  ;;  %477 = vmatprep.subr.bf16.mxu1 %v586_v4  ;;  %v150_v60 = vstv %s732_s14  ;;  %vm145_vm12 = vcmp.eq.s32.totalorder %v666_v11, %v144_v57  ;;  %v156_v63 = vstv %s739_s15 }
  0x44   :  { %v93_v43 = vadd.s32 %v92_v36, %v87_v37  ;;  %vm122_vm7 = vmand %vm112_vm2, %vm121_vm5  ;;  %v117_v54 = vsel %vm116_vm6, 1, %v589_v24  ;;  %vm151_vm14 = vcmp.eq.s32.totalorder %v666_v11, %v150_v60  ;;  %vm157_vm0 = vcmp.eq.s32.totalorder %v666_v11, %v156_v63 }
  0x45   :  { %vm128_vm9 = vmand %vm112_vm2, %vm127_vm1  ;;  %v123_v58 = vsel %vm122_vm7, 1, %v589_v24  ;;  %vm173_vm5 = vcmask 261120   ;;  %v481_v16 = vpack.c.bf16 %v259_v15, %v258_v14  ;;  %vm344_vm1 = vcmp.lt.s32.totalorder %v666_v11, 2 }
  0x46   :  { %v99_v47 = vadd.s32 %v98_v41, %v93_v43  ;;  %vm134_vm11 = vmand %vm112_vm2, %vm133_vm8  ;;  %v129_v61 = vsel %vm128_vm9, 1, %v589_v24  ;;  %479 = vmatpush3.bf16.msra.mxu1 %v478_v55  ;;  %vm341_vm7 = vcmp.lt.s32.totalorder %v666_v11, 1 }
  0x47   :  { %vm140_vm13 = vmand %vm112_vm2, %vm139_vm10  ;;  %480 = vmatprep.subr.bf16.mxu1 %v586_v4  ;;  %v135_v0 = vsel %vm134_vm11, 1, %v589_v24 }
  0x48   :  { %v105_v52 = vadd.s32 %v104_v45, %v99_v47  ;;  %vm146_vm15 = vmand %vm112_vm2, %vm145_vm12  ;;  %v141_v2 = vsel %vm140_vm13, 1, %v589_v24 }
  0x49   :  { %vm152_vm3 = vmand %vm112_vm2, %vm151_vm14  ;;  %v147_v5 = vsel %vm146_vm15, 1, %v589_v24 }
  0x4a   :  { %v111_v56 = vadd.s32 %v110_v51, %v105_v52  ;;  %vm158_vm4 = vmand %vm112_vm2, %vm157_vm0  ;;  %v153_v4 = vsel %vm152_vm3, 1, %v589_v24  ;;  %482 = vmatpush3.bf16.msra.mxu1 %v481_v16  ;;  %vm267_vm2 = vcmask 785408  }
  0x4b   :  { %v159_v9 = vsel %vm158_vm4, 1, %v589_v24 }
  0x4c   :  { %v118_v59 = vadd.s32 %v117_v54, %v111_v56 }
  0x4e   :  { %v124_v62 = vadd.s32 %v123_v58, %v118_v59 }
  0x50   :  { %v130_v1 = vadd.s32 %v129_v61, %v124_v62 }
  0x52   :  { %v136_v3 = vadd.s32 %v135_v0, %v130_v1 }
  0x54   :  { %v142_v6 = vadd.s32 %v141_v2, %v136_v3 }
  0x56   :  { %v148_v7 = vadd.s32 %v147_v5, %v142_v6 }
  0x58   :  { %v154_v10 = vadd.s32 %v153_v4, %v148_v7 }
  0x5a   :  { %v160_v12 = vadd.s32 %v159_v9, %v154_v10 }
  0x5c   :  { %v161_v13 = vcvt.s32.f32 %v160_v12 }
  0x5e   :  { %430 = vmatmul.mubr.msk.f32.vlgmr.msra.gmra.mrb[0].mxu0 %vm173_vm5, %v161_v13 }
 0x131   :  { %v243_v8 = vpop.f32.mrb[0].mxu0 }
 0x132   :  { %v244_v18 = vadd.f32 %v398_v17, %v243_v8  ;;  %v431_v19 = vpop.f32.mrb[1].mxu0 }
 0x134   :  { %v247_v20 = vmax.f32 %v244_v18, 0.0 }
 0x136   :  { %457 = vmatmul.mubr.msk.f32.vlgmr.msra.gmra.mrb[0].mxu1 %vm267_vm2, %v247_v20 }
 0x209   :  { %v337_v22 = vpop.f32.mrb[0].mxu1 }
 0x20a   :  { %v338_v23 = vadd.f32 %v400_v21, %v337_v22  ;;  %v458_v24 = vpop.f32.mrb[1].mxu1 }
 0x20c   :  { %v348_v25 = vand.u32 2147483647, %v338_v23  ;;  %v345_v36 = vmax.f32 %v338_v23, 0.0  ;;  %vm346_vm8 = vcmp.ne.f32.partialorder %v338_v23, %v338_v23  ;;  %v402_v39 = vclamps-f32 %v338_v23, 1.0 }
 0x20e   :  { %v349_v26 = vsub.f32 0.0, %v348_v25 }
 0x210   :  { %v350_v27 = vmul.f32 1.442695, %v349_v26 }
 0x212   :  { %493 = vpow2.f32 %v350_v27 }
 0x21c   :  { %v494_v28 = vpop.eup %493 }
 0x21d   :  { %v352_v29 = vadd.f32 1.0, %v494_v28  ;;  %v355_v30 = vmul.f32 -0.5, %v494_v28  ;;  %v358_v32 = vand.u32 2147483647, %v494_v28 }
 0x21f   :  { %495 = vlog2.f32 %v352_v29  ;;  %v356_v31 = vadd.f32 1.0, %v355_v30  ;;  %vm359_vm6 = vcmp.lt.f32.partialorder %v358_v32, 0.0004427343 }
 0x221   :  { %v357_v35 = vmul.f32 %v494_v28, %v356_v31 }
 0x229   :  { %v496_v33 = vpop.eup %495 }
 0x22a   :  { %v354_v34 = vmul.f32 0.6931472, %v496_v33 }
 0x22c   :  { %v360_v37 = vsel %vm359_vm6, %v357_v35, %v354_v34 }
 0x22d   :  { %v361_v38 = vadd.f32 %v360_v37, %v345_v36 }
 0x22f   :  { %v362_v40 = vsel %vm346_vm8, %v338_v23, %v361_v38 }
 0x230   :  { %v363_v41 = vsel %vm344_vm1, %v362_v40, %v338_v23 }
 0x231   :  { %v364_v42 = vsel %vm341_vm7, %v402_v39, %v363_v41 }
 0x232   :  { %365 = vst [vmem:[#allocation9] sm:$0x3] %v364_v42 }
 0x233   :  { %562 = shalt.err (!%p559_p9)
}
 0x234   :  { %s563_s23 = scalar_lea.hbm %s802_s5, 32 }
 0x235   :  { %p564_p10 = scmp.ne.s32.totalorder %s802_s5, %s563_s23  ;;  %p567_p11 = scmp.lt.u32.totalorder %s563_s23, %s802_s5 }
 0x237   :  { %p569_p12 = pnand %p567_p11, %p564_p10 }
 0x239   :  { %572 = shalt.err (!%p569_p12)
}
 0x23a   :  { %375 = dma.vmem_to_hbm [thread:$0]  %s373_s4, 32, %s802_s5, [#allocation4]  }
 0x23b   :  { %579 = dma.done.wait [#allocation4], 32  }
 0x23c   :  { %580 = vsyncadd [#allocation4], 4294967264 }
 0x23d   :  { %379 = vsyncpa [#allocation3], 1 }
 0x23e   :  { %380 = vsyncpa [#allocation8], 1 }
 0x23f   :  { %381 = vsyncpa [#allocation4], 1 }
 0x240   :  { %382 = vsyncpa [#allocation5], 1 }

</bundles_post_ra>
